<compile_context>
chip_gen: v5e
topology: v5e:2x2
jax: 0.10.0
libtpu: 0.0.40
codegen_flags: <defaults>
</compile_context>

<pallas_src>
import jax
import jax.numpy as jnp
from jax import lax
from jax.experimental import pallas as pl
from jax.experimental.pallas import tpu as pltpu


def _mlp_kernel(x_ref, w1t_ref, b1_ref, w2_ref, b2_ref, o_ref):
    # x_ref  : (TB, F)  compute dtype (bf16)  -- one batch tile (streamed)
    # w1t_ref: (H, F)   compute dtype         -- fc1 weight, (out, in) layout
    # b1_ref : (H, 1)   f32
    # w2_ref : (H, 1)   f32                   -- fc2 weight as a column
    # b2_ref : (1, 1)   f32 in SMEM
    # o_ref  : (1, TB)  f32                   -- batch on the lane axis
    # fc1 on the MXU: contract the F axis of both operands -> (H, TB), f32 acc.
    h = lax.dot_general(
        w1t_ref[...],
        x_ref[...],
        dimension_numbers=(((1,), (1,)), ((), ())),
        preferred_element_type=jnp.float32,
    )
    # Bias + ReLU on the f32 accumulator (VPU).
    h = jnp.maximum(h + b1_ref[...], 0.0)
    # fc2 (H -> 1): VPU multiply + sublane reduce over H; MXU stays free.
    out = jnp.sum(h * w2_ref[...], axis=0, keepdims=True)  # (1, TB)
    o_ref[...] = (out + b2_ref[0, 0]).astype(o_ref.dtype)


def net_forward(x, w1, b1, w2, b2, *, block_b=2048, compute_dtype=jnp.bfloat16):
    """Fused fc1 -> relu -> fc2 forward pass.

    x:  (B, F) float32
    w1: (F, H) float32, b1: (H,) float32     (w1 is torch fc1.weight.T)
    w2: (H, 1) float32, b2: (1,) float32     (w2 is torch fc2.weight.T)
    returns (B, 1) float32
    """
    B, F = x.shape
    H = w1.shape[1]

    # Pad the batch to a multiple of the tile; padded rows are discarded.
    num_tiles = max(1, pl.cdiv(B, block_b))
    b_pad = num_tiles * block_b
    if b_pad != B:
        x = jnp.pad(x, ((0, b_pad - B), (0, 0)))

    x_c = x.astype(compute_dtype)
    w1t_c = jnp.transpose(w1).astype(compute_dtype)        # (H, F)
    b1_col = b1.reshape(H, 1).astype(jnp.float32)
    w2_col = w2.reshape(H, 1).astype(jnp.float32)
    b2_s = b2.reshape(1, 1).astype(jnp.float32)

    out = pl.pallas_call(
        _mlp_kernel,
        out_shape=jax.ShapeDtypeStruct((1, b_pad), jnp.float32),
        grid=(num_tiles,),
        in_specs=[
            pl.BlockSpec((block_b, F), lambda i: (i, 0)),           # streamed x tile
            pl.BlockSpec((H, F), lambda i: (0, 0)),                 # resident fc1 W
            pl.BlockSpec((H, 1), lambda i: (0, 0)),                 # resident b1
            pl.BlockSpec((H, 1), lambda i: (0, 0)),                 # resident fc2 W
            pl.BlockSpec(memory_space=pltpu.MemorySpace.SMEM),      # b2 scalar
        ],
        out_specs=pl.BlockSpec((1, block_b), lambda i: (0, i)),     # lane-dense out
        compiler_params=pltpu.CompilerParams(
            dimension_semantics=("parallel",),
            vmem_limit_bytes=32 * 1024 * 1024,
        ),
    )(x_c, w1t_c, b1_col, w2_col, b2_s)

    # (1, b_pad) -> (B, 1)
    return out.reshape(b_pad, 1)[:B]


if __name__ == "__main__":
    # in_features = len(keywords) + len(genres) + len(tags); pick 32 (e.g. 12+10+10)
    BATCH = 8
    IN_FEATURES = 32
    HIDDEN = 10

    key = jax.random.PRNGKey(0)
    kx, kw1, kb1, kw2, kb2 = jax.random.split(key, 5)

    x = jax.random.normal(kx, (BATCH, IN_FEATURES), dtype=jnp.float32)
    # Deterministic parameter init (mimicking torch's uniform fan-in init bounds).
    lim1 = 1.0 / jnp.sqrt(IN_FEATURES)
    w1 = jax.random.uniform(kw1, (IN_FEATURES, HIDDEN), jnp.float32, -lim1, lim1)
    b1 = jax.random.uniform(kb1, (HIDDEN,), jnp.float32, -lim1, lim1)
    lim2 = 1.0 / jnp.sqrt(HIDDEN)
    w2 = jax.random.uniform(kw2, (HIDDEN, 1), jnp.float32, -lim2, lim2)
    b2 = jax.random.uniform(kb2, (1,), jnp.float32, -lim2, lim2)

    out = net_forward(x, w1, b1, w2, b2)
    jax.block_until_ready(out)

    # Reference in plain JAX with the same bf16-rounded MXU operands
    # (f32 accumulation both sides), so the comparison is apples-to-apples.
    x_r = x.astype(jnp.bfloat16).astype(jnp.float32)
    w1_r = w1.astype(jnp.bfloat16).astype(jnp.float32)
    ref = jnp.maximum(x_r @ w1_r + b1, 0.0) @ w2 + b2

    assert out.shape == (BATCH, 1)
    assert jnp.allclose(out, ref, atol=1e-4, rtol=1e-4)

    print("KERNEL_OK")
</pallas_src>

<mosaic_0001>
module attributes {stable_mosaic.version = 11 : i64} {
  func.func @_mlp_kernel(%arg0: i32, %arg1: memref<2048x32xbf16, #tpu.memory_space<vmem>>, %arg2: memref<10x32xbf16, #tpu.memory_space<vmem>>, %arg3: memref<10x1xf32, #tpu.memory_space<vmem>>, %arg4: memref<10x1xf32, #tpu.memory_space<vmem>>, %arg5: memref<1x1xf32, #tpu.memory_space<smem>>, %arg6: memref<1x2048xf32, #tpu.memory_space<vmem>>) attributes {dimension_semantics = [#tpu.dimension_semantics<parallel>], iteration_bounds = array<i64: 1>, scalar_prefetch = 0 : i64, scratch_operands = 0 : i64, tpu.core_type = #tpu.core_type<tc>, window_params = [{transform_indices = @transform_0, window_bounds = array<i64: 2048, 32>}, {pipeline_mode = #tpu.pipeline_mode<synchronous>, transform_indices = @transform_1, window_bounds = array<i64: 10, 32>}, {pipeline_mode = #tpu.pipeline_mode<synchronous>, transform_indices = @transform_2, window_bounds = array<i64: 10, 1>}, {pipeline_mode = #tpu.pipeline_mode<synchronous>, transform_indices = @transform_3, window_bounds = array<i64: 10, 1>}, {transform_indices = @transform_4, window_bounds = array<i64: 1, 1>}, {transform_indices = @transform_5, window_bounds = array<i64: 1, 2048>}]} {
    %c0 = arith.constant 0 : index
    %c0_0 = arith.constant 0 : index
    %0 = vector.load %arg2[%c0, %c0_0] : memref<10x32xbf16, #tpu.memory_space<vmem>>, vector<10x32xbf16>
    %c0_1 = arith.constant 0 : index
    %c0_2 = arith.constant 0 : index
    %1 = vector.load %arg1[%c0_1, %c0_2] : memref<2048x32xbf16, #tpu.memory_space<vmem>>, vector<2048x32xbf16>
    %cst = arith.constant dense<0.000000e+00> : vector<10x2048xf32>
    %2 = tpu.matmul %0, %1, %cst {dimension_numbers = #tpu.dot_dimension_numbers<[1], [1], [0], [0], [0, 0, 1, 0], [], []>} : vector<10x32xbf16>, vector<2048x32xbf16>, vector<10x2048xf32> -> vector<10x2048xf32>
    %c0_3 = arith.constant 0 : index
    %c0_4 = arith.constant 0 : index
    %3 = vector.load %arg3[%c0_3, %c0_4] : memref<10x1xf32, #tpu.memory_space<vmem>>, vector<10x1xf32>
    %4 = vector.broadcast %3 : vector<10x1xf32> to vector<10x2048xf32>
    %5 = arith.addf %2, %4 : vector<10x2048xf32>
    %cst_5 = arith.constant 0.000000e+00 : f32
    %6 = vector.broadcast %cst_5 : f32 to vector<10x2048xf32>
    %7 = arith.maximumf %5, %6 : vector<10x2048xf32>
    %c0_6 = arith.constant 0 : index
    %c0_7 = arith.constant 0 : index
    %8 = vector.load %arg4[%c0_6, %c0_7] : memref<10x1xf32, #tpu.memory_space<vmem>>, vector<10x1xf32>
    %9 = vector.broadcast %8 : vector<10x1xf32> to vector<10x2048xf32>
    %10 = arith.mulf %7, %9 : vector<10x2048xf32>
    %cst_8 = arith.constant dense<0.000000e+00> : vector<2048xf32>
    %11 = vector.multi_reduction <add>, %10, %cst_8 [0] : vector<10x2048xf32> to vector<2048xf32>
    %12 = vector.shape_cast %11 : vector<2048xf32> to vector<1x2048xf32>
    %c0_9 = arith.constant 0 : index
    %c0_10 = arith.constant 0 : index
    %13 = memref.load %arg5[%c0_9, %c0_10] : memref<1x1xf32, #tpu.memory_space<smem>>
    %14 = vector.broadcast %13 : f32 to vector<1x2048xf32>
    %15 = arith.addf %12, %14 : vector<1x2048xf32>
    %c0_11 = arith.constant 0 : index
    %c0_12 = arith.constant 0 : index
    %16 = vector.load %arg6[%c0_11, %c0_12] : memref<1x2048xf32, #tpu.memory_space<vmem>>, vector<1x2048xf32>
    tpu.vector_store %arg6[%c0_11, %c0_12], %15 {strides = array<i32>} : memref<1x2048xf32, #tpu.memory_space<vmem>>, vector<1x2048xf32>,
    return
  }
  func.func @transform_0(%arg0: i32) -> (i32, i32) {
    %c0_i32 = arith.constant 0 : i32
    %c0_i32_0 = arith.constant 0 : i32
    return %arg0, %c0_i32 : i32, i32
  }
  func.func @transform_1(%arg0: i32) -> (i32, i32) {
    %c0_i32 = arith.constant 0 : i32
    %c0_i32_0 = arith.constant 0 : i32
    %c0_i32_1 = arith.constant 0 : i32
    return %c0_i32, %c0_i32_0 : i32, i32
  }
  func.func @transform_2(%arg0: i32) -> (i32, i32) {
    %c0_i32 = arith.constant 0 : i32
    %c0_i32_0 = arith.constant 0 : i32
    %c0_i32_1 = arith.constant 0 : i32
    return %c0_i32, %c0_i32_0 : i32, i32
  }
  func.func @transform_3(%arg0: i32) -> (i32, i32) {
    %c0_i32 = arith.constant 0 : i32
    %c0_i32_0 = arith.constant 0 : i32
    %c0_i32_1 = arith.constant 0 : i32
    return %c0_i32, %c0_i32_0 : i32, i32
  }
  func.func @transform_4(%arg0: i32) -> (i32, i32) {
    %c0_i32 = arith.constant 0 : i32
    %c0_i32_0 = arith.constant 0 : i32
    %c0_i32_1 = arith.constant 0 : i32
    return %c0_i32, %c0_i32_0 : i32, i32
  }
  func.func @transform_5(%arg0: i32) -> (i32, i32) {
    %c0_i32 = arith.constant 0 : i32
    %c0_i32_0 = arith.constant 0 : i32
    return %c0_i32, %arg0 : i32, i32
  }
}

</mosaic_0001>

<bundles_post_ra>
// kernel: tpu_custom_call.1
= control target key start
LH: loop header
LB: loop body
LE: loop exit
PB: predicated region body
PF: predicated region fallthrough
CT: control target
= control target key end

     0   :  { %vm937_vm0 = vcmask 261120   ;;  %s3255_s0 = inlined_call_operand.vmem [shape: bf16[2048,32], index: 0, kind: input, shape index: {}]   ;;  %s3256_s1 = inlined_call_operand.vmem [shape: bf16[10,32], index: 1, kind: input, shape index: {}]   ;;  %s3257_s2 = inlined_call_operand.vmem [shape: f32[10,1], index: 2, kind: input, shape index: {}]   ;;  %s3258_s3 = inlined_call_operand.vmem [shape: f32[10,1], index: 3, kind: input, shape index: {}]   ;;  %s3259_s4 = inlined_call_operand.<no memory space> [shape: f32[1,1], index: 4, kind: input, shape index: {}]   ;;  %s3260_s5 = inlined_call_operand.hbm [shape: f32[1,2048], index: 5, kind: output, shape index: {}]  }
   0x1   :  { %v2382_v0 = vld [vmem:[%s3255_s0 + $0x38] sm:$0xff]  ;;  %v2381_v8 = vld [vmem:[%s3255_s0 + $0x30] sm:$0xff] }
   0x2   :  { %v2390_v1 = vld [vmem:[%s3255_s0 + $0x78] sm:$0xff]  ;;  %v963_v4 = vsel %vm937_vm0, %v2382_v0, 0  ;;  %v2389_v9 = vld [vmem:[%s3255_s0 + $0x70] sm:$0xff] }
   0x3   :  { %v2398_v2 = vld [vmem:[%s3255_s0 + $0xb8] sm:$0xff]  ;;  %v987_v5 = vsel %vm937_vm0, %v2390_v1, 0  ;;  %1325 = vmatpush.bf16.xpose.msra.mxu0 %v963_v4  ;;  %v2397_v10 = vld [vmem:[%s3255_s0 + $0xb0] sm:$0xff] }
   0x4   :  { %v2406_v3 = vld [vmem:[%s3255_s0 + $0xf8] sm:$0xff]  ;;  %v1011_v6 = vsel %vm937_vm0, %v2398_v2, 0  ;;  %1339 = vmatpush.bf16.xpose.msra.mxu1 %v987_v5  ;;  %v2405_v11 = vld [vmem:[%s3255_s0 + $0xf0] sm:$0xff] }
   0x5   :  { %v1035_v7 = vsel %vm937_vm0, %v2406_v3, 0  ;;  %1353 = vmatpush.bf16.xpose.msra.mxu2 %v1011_v6 }
   0x6   :  { %1367 = vmatpush.bf16.xpose.msra.mxu3 %v1035_v7 }
   0x7   :  { %11 = vsyncpa [#allocation4], 0  ;;  %v960_v12 = vsel %vm937_vm0, %v2381_v8, 0  ;;  %v984_v13 = vsel %vm937_vm0, %v2389_v9, 0  ;;  %v1008_v14 = vsel %vm937_vm0, %v2397_v10, 0  ;;  %v1032_v15 = vsel %vm937_vm0, %v2405_v11, 0 }
   0x8   :  { %v2380_v16 = vld [vmem:[%s3255_s0 + $0x28] sm:$0xff]  ;;  %v2379_v24 = vld [vmem:[%s3255_s0 + $0x20] sm:$0xff]  ;;  %v2378_v32 = vld [vmem:[%s3255_s0 + $0x18] sm:$0xff]  ;;  %vm1625_vm1 = vcmask 1041408   ;;  %vm1802_vm2 = vcmask 1040384   ;;  %vm1804_vm3 = vcmask 1042434  }
   0x9   :  { %v2388_v17 = vld [vmem:[%s3255_s0 + $0x68] sm:$0xff]  ;;  %v957_v20 = vsel %vm937_vm0, %v2380_v16, 0  ;;  %v2387_v25 = vld [vmem:[%s3255_s0 + $0x60] sm:$0xff]  ;;  %v954_v28 = vsel %vm937_vm0, %v2379_v24, 0  ;;  %v2386_v33 = vld [vmem:[%s3255_s0 + $0x58] sm:$0xff]  ;;  %v951_v36 = vsel %vm937_vm0, %v2378_v32, 0 }
   0xa   :  { %v2396_v18 = vld [vmem:[%s3255_s0 + $0xa8] sm:$0xff]  ;;  %v981_v21 = vsel %vm937_vm0, %v2388_v17, 0  ;;  %v2395_v26 = vld [vmem:[%s3255_s0 + $0xa0] sm:$0xff]  ;;  %v978_v29 = vsel %vm937_vm0, %v2387_v25, 0  ;;  %v2394_v34 = vld [vmem:[%s3255_s0 + $0x98] sm:$0xff]  ;;  %v975_v37 = vsel %vm937_vm0, %v2386_v33, 0 }
   0xb   :  { %1326 = vmatpush.bf16.xpose.msra.mxu0 %v960_v12  ;;  %v2404_v19 = vld [vmem:[%s3255_s0 + $0xe8] sm:$0xff]  ;;  %v1005_v22 = vsel %vm937_vm0, %v2396_v18, 0  ;;  %v2403_v27 = vld [vmem:[%s3255_s0 + $0xe0] sm:$0xff]  ;;  %v1002_v30 = vsel %vm937_vm0, %v2395_v26, 0  ;;  %v2402_v35 = vld [vmem:[%s3255_s0 + $0xd8] sm:$0xff]  ;;  %v999_v38 = vsel %vm937_vm0, %v2394_v34, 0 }
   0xc   :  { %1340 = vmatpush.bf16.xpose.msra.mxu1 %v984_v13  ;;  %v1029_v23 = vsel %vm937_vm0, %v2404_v19, 0  ;;  %v1026_v31 = vsel %vm937_vm0, %v2403_v27, 0  ;;  %v1023_v39 = vsel %vm937_vm0, %v2402_v35, 0  ;;  %v2377_v40 = vld [vmem:[%s3255_s0 + $0x10] sm:$0xff]  ;;  %v2376_v48 = vld [vmem:[%s3255_s0 + $0x8] sm:$0xff]  ;;  %v2375_v56 = vld [vmem:[%s3255_s0] sm:$0xff] }
   0xd   :  { %1354 = vmatpush.bf16.xpose.msra.mxu2 %v1008_v14  ;;  %v2385_v41 = vld [vmem:[%s3255_s0 + $0x50] sm:$0xff]  ;;  %v948_v44 = vsel %vm937_vm0, %v2377_v40, 0  ;;  %v2384_v49 = vld [vmem:[%s3255_s0 + $0x48] sm:$0xff]  ;;  %v945_v52 = vsel %vm937_vm0, %v2376_v48, 0  ;;  %v2383_v57 = vld [vmem:[%s3255_s0 + $0x40] sm:$0xff]  ;;  %v942_v0 = vsel %vm937_vm0, %v2375_v56, 0 }
   0xe   :  { %1368 = vmatpush.bf16.xpose.msra.mxu3 %v1032_v15  ;;  %v2393_v42 = vld [vmem:[%s3255_s0 + $0x90] sm:$0xff]  ;;  %v972_v45 = vsel %vm937_vm0, %v2385_v41, 0  ;;  %v2392_v50 = vld [vmem:[%s3255_s0 + $0x88] sm:$0xff]  ;;  %v969_v53 = vsel %vm937_vm0, %v2384_v49, 0  ;;  %v2391_v58 = vld [vmem:[%s3255_s0 + $0x80] sm:$0xff]  ;;  %v966_v1 = vsel %vm937_vm0, %v2383_v57, 0 }
   0xf   :  { %v2401_v43 = vld [vmem:[%s3255_s0 + $0xd0] sm:$0xff]  ;;  %v996_v46 = vsel %vm937_vm0, %v2393_v42, 0  ;;  %v2400_v51 = vld [vmem:[%s3255_s0 + $0xc8] sm:$0xff]  ;;  %v993_v54 = vsel %vm937_vm0, %v2392_v50, 0  ;;  %v2399_v59 = vld [vmem:[%s3255_s0 + $0xc0] sm:$0xff]  ;;  %v990_v2 = vsel %vm937_vm0, %v2391_v58, 0 }
  0x10   :  { %v1020_v47 = vsel %vm937_vm0, %v2401_v43, 0  ;;  %v1017_v55 = vsel %vm937_vm0, %v2400_v51, 0  ;;  %v2414_v60 = vld [vmem:[%s3255_s0 + $0x138] sm:$0xff]  ;;  %v1014_v3 = vsel %vm937_vm0, %v2399_v59, 0  ;;  %v2413_v8 = vld [vmem:[%s3255_s0 + $0x130] sm:$0xff]  ;;  %v2412_v19 = vld [vmem:[%s3255_s0 + $0x128] sm:$0xff] }
  0x11   :  { %v2422_v61 = vld [vmem:[%s3255_s0 + $0x178] sm:$0xff]  ;;  %v1059_v4 = vsel %vm937_vm0, %v2414_v60, 0  ;;  %v2421_v9 = vld [vmem:[%s3255_s0 + $0x170] sm:$0xff]  ;;  %v1844_v10 = vld [vmem:[%s3256_s1] sm:$0xf]  ;;  %v1056_v15 = vsel %vm937_vm0, %v2413_v8, 0 }
  0x12   :  { %v2430_v62 = vld [vmem:[%s3255_s0 + $0x1b8] sm:$0xff]  ;;  %v1083_v5 = vsel %vm937_vm0, %v2422_v61, 0  ;;  %v2374_v11 = vld [vmem:[%s3256_s1] sm:$0x10]  ;;  %v2429_v12 = vld [vmem:[%s3255_s0 + $0x1b0] sm:$0xff]  ;;  %v1080_v16 = vsel %vm937_vm0, %v2421_v9, 0 }
  0x13   :  { %1327 = vmatpush.bf16.xpose.msra.mxu0 %v957_v20  ;;  %v2438_v63 = vld [vmem:[%s3255_s0 + $0x1f8] sm:$0xff]  ;;  %v1107_v6 = vsel %vm937_vm0, %v2430_v62, 0  ;;  %v2437_v13 = vld [vmem:[%s3255_s0 + $0x1f0] sm:$0xff]  ;;  %v2727_v14 = vor.u32 %v2374_v11, %v1844_v10  ;;  %v1104_v17 = vsel %vm937_vm0, %v2429_v12, 0  ;;  %v2420_v20 = vld [vmem:[%s3255_s0 + $0x168] sm:$0xff]  ;;  %vm1807_vm4 = vcmask 1044484  }
  0x14   :  { %1341 = vmatpush.bf16.xpose.msra.mxu1 %v981_v21  ;;  %v1131_v7 = vsel %vm937_vm0, %v2438_v63, 0  ;;  %v1128_v18 = vsel %vm937_vm0, %v2437_v13, 0  ;;  %v2428_v21 = vld [vmem:[%s3255_s0 + $0x1a8] sm:$0xff]  ;;  %v1077_v24 = vsel %vm937_vm0, %v2420_v20, 0  ;;  %v2411_v27 = vld [vmem:[%s3255_s0 + $0x120] sm:$0xff]  ;;  %v2410_v35 = vld [vmem:[%s3255_s0 + $0x118] sm:$0xff] }
  0x15   :  { %1355 = vmatpush.bf16.xpose.msra.mxu2 %v1005_v22  ;;  %v2436_v22 = vld [vmem:[%s3255_s0 + $0x1e8] sm:$0xff]  ;;  %v1101_v25 = vsel %vm937_vm0, %v2428_v21, 0  ;;  %v1047_v42 = vsel %vm937_vm0, %v2410_v35, 0  ;;  %v2425_v48 = vld [vmem:[%s3255_s0 + $0x190] sm:$0xff]  ;;  %v280_v50 = vld [vmem:[%s3257_s2] sm:$0xff]  ;;  %vm1809_vm5 = vcmask 1046534  }
  0x16   :  { %1369 = vmatpush.bf16.xpose.msra.mxu3 %v1029_v23  ;;  %v1053_v23 = vsel %vm937_vm0, %v2412_v19, 0  ;;  %v1125_v26 = vsel %vm937_vm0, %v2436_v22, 0  ;;  %v281_v40 = vld [vmem:[%s3257_s2 + $0x8] sm:$0x3]  ;;  %v2433_v49 = vld [vmem:[%s3255_s0 + $0x1d0] sm:$0xff]  ;;  %v1581_v51 = vld [vmem:[%s3258_s3] sm:$0xff] }
  0x17   :  { %v1582_v41 = vld [vmem:[%s3258_s3 + $0x8] sm:$0x3]  ;;  %v2461_v19 = vld [vmem:[%s3255_s0 + $0x2b0] sm:$0xff]  ;;  %v2459_v35 = vld [vmem:[%s3255_s0 + $0x2a0] sm:$0xff]  ;;  %vm1811_vm6 = vcmask 1045508   ;;  %vm1813_vm7 = vcmask 1043456  }
  0x18   :  { %v2408_v56 = vld [vmem:[%s3255_s0 + $0x108] sm:$0xff]  ;;  %v2469_v20 = vld [vmem:[%s3255_s0 + $0x2f0] sm:$0xff]  ;;  %s1833_s21 = sshll.u32 %s3260_s5, 4  ;;  %s1834_s21 = int_to_ptr.hbm [resolvable:$true] %s1833_s21 }
  0x19   :  { %v2416_v57 = vld [vmem:[%s3255_s0 + $0x148] sm:$0xff]  ;;  %v1041_v60 = vsel %vm937_vm0, %v2408_v56, 0 }
  0x1a   :  { %v2424_v58 = vld [vmem:[%s3255_s0 + $0x188] sm:$0xff]  ;;  %v1065_v61 = vsel %vm937_vm0, %v2416_v57, 0 }
  0x1b   :  { %1328 = vmatpush.bf16.xpose.msra.mxu0 %v954_v28  ;;  %v2419_v28 = vld [vmem:[%s3255_s0 + $0x160] sm:$0xff]  ;;  %v2432_v59 = vld [vmem:[%s3255_s0 + $0x1c8] sm:$0xff]  ;;  %v1089_v62 = vsel %vm937_vm0, %v2424_v58, 0 }
  0x1c   :  { %1342 = vmatpush.bf16.xpose.msra.mxu1 %v978_v29  ;;  %v2427_v29 = vld [vmem:[%s3255_s0 + $0x1a0] sm:$0xff]  ;;  %v1074_v32 = vsel %vm937_vm0, %v2419_v28, 0  ;;  %v1113_v63 = vsel %vm937_vm0, %v2432_v59, 0  ;;  %v2468_v28 = vld [vmem:[%s3255_s0 + $0x2e8] sm:$0xff] }
  0x1d   :  { %1356 = vmatpush.bf16.xpose.msra.mxu2 %v1002_v30  ;;  %v2435_v30 = vld [vmem:[%s3255_s0 + $0x1e0] sm:$0xff]  ;;  %v1098_v33 = vsel %vm937_vm0, %v2427_v29, 0  ;;  %v2440_v57 = vld [vmem:[%s3255_s0 + $0x208] sm:$0xff] }
  0x1e   :  { %1370 = vmatpush.bf16.xpose.msra.mxu3 %v1026_v31  ;;  %v1050_v31 = vsel %vm937_vm0, %v2411_v27, 0  ;;  %v1122_v34 = vsel %vm937_vm0, %v2435_v30, 0  ;;  %v2460_v27 = vld [vmem:[%s3255_s0 + $0x2a8] sm:$0xff] }
  0x1f   :  { %v2448_v58 = vld [vmem:[%s3255_s0 + $0x248] sm:$0xff] }
  0x20   :  { %v2456_v59 = vld [vmem:[%s3255_s0 + $0x288] sm:$0xff] }
  0x23   :  { %1329 = vmatpush.bf16.xpose.msra.mxu0 %v951_v36  ;;  %v2418_v36 = vld [vmem:[%s3255_s0 + $0x158] sm:$0xff] }
  0x24   :  { %1343 = vmatpush.bf16.xpose.msra.mxu1 %v975_v37  ;;  %v2426_v37 = vld [vmem:[%s3255_s0 + $0x198] sm:$0xff]  ;;  %v1071_v43 = vsel %vm937_vm0, %v2418_v36, 0  ;;  %v2467_v36 = vld [vmem:[%s3255_s0 + $0x2e0] sm:$0xff] }
  0x25   :  { %1357 = vmatpush.bf16.xpose.msra.mxu2 %v999_v38  ;;  %v2434_v38 = vld [vmem:[%s3255_s0 + $0x1d8] sm:$0xff] }
  0x26   :  { %1371 = vmatpush.bf16.xpose.msra.mxu3 %v1023_v39  ;;  %v2533_v39 = vmov 0  }
  0x27   :  { %2505 = vset.pattern.permute.xlu0 %v2533_v39  ;;  %2506 = vset.pattern.permute.xlu1 %v2533_v39  ;;  %v1194_v39 = vsel %vm937_vm0, %v2459_v35, 0  ;;  %v2483_v35 = vld [vmem:[%s3255_s0 + $0x360] sm:$0xff] }
  0x28   :  { %289 = vperm.xlu0 %2505, %v281_v40   ;;  %1590 = vperm.xlu1 %2506, %v1582_v41   ;;  %v1218_v40 = vsel %vm937_vm0, %v2467_v36, 0  ;;  %v2442_v41 = vld [vmem:[%s3255_s0 + $0x218] sm:$0xff]  ;;  %v2491_v36 = vld [vmem:[%s3255_s0 + $0x3a0] sm:$0xff] }
  0x2b   :  { %1330 = vmatpush.bf16.xpose.msra.mxu0 %v948_v44  ;;  %v1095_v44 = vsel %vm937_vm0, %v2426_v37, 0 }
  0x2c   :  { %1344 = vmatpush.bf16.xpose.msra.mxu1 %v972_v45  ;;  %v1119_v45 = vsel %vm937_vm0, %v2434_v38, 0 }
  0x2d   :  { %1358 = vmatpush.bf16.xpose.msra.mxu2 %v996_v46  ;;  %v2409_v46 = vld [vmem:[%s3255_s0 + $0x110] sm:$0xff] }
  0x2e   :  { %1372 = vmatpush.bf16.xpose.msra.mxu3 %v1020_v47  ;;  %v2417_v47 = vld [vmem:[%s3255_s0 + $0x150] sm:$0xff] }
  0x30   :  { %284 = vperm.xlu0 %2505, %v280_v50   ;;  %1585 = vperm.xlu1 %2506, %v1581_v51   ;;  %v2449_v50 = vld [vmem:[%s3255_s0 + $0x250] sm:$0xff] }
  0x31   :  { %v2457_v51 = vld [vmem:[%s3255_s0 + $0x290] sm:$0xff] }
  0x33   :  { %1331 = vmatpush.bf16.xpose.msra.mxu0 %v945_v52  ;;  %v1044_v52 = vsel %vm937_vm0, %v2409_v46, 0 }
  0x34   :  { %1345 = vmatpush.bf16.xpose.msra.mxu1 %v969_v53  ;;  %v1068_v53 = vsel %vm937_vm0, %v2417_v47, 0 }
  0x35   :  { %1359 = vmatpush.bf16.xpose.msra.mxu2 %v993_v54  ;;  %v1092_v54 = vsel %vm937_vm0, %v2425_v48, 0 }
  0x36   :  { %1373 = vmatpush.bf16.xpose.msra.mxu3 %v1017_v55  ;;  %v1116_v55 = vsel %vm937_vm0, %v2433_v49, 0  ;;  %v2441_v49 = vld [vmem:[%s3255_s0 + $0x210] sm:$0xff] }
  0x3b   :  { %1332 = vmatpush.bf16.xpose.msra.mxu0 %v942_v0  ;;  %v2407_v0 = vld [vmem:[%s3255_s0 + $0x100] sm:$0xff] }
  0x3c   :  { %1346 = vmatpush.bf16.xpose.msra.mxu1 %v966_v1  ;;  %v2415_v1 = vld [vmem:[%s3255_s0 + $0x140] sm:$0xff]  ;;  %v1038_v8 = vsel %vm937_vm0, %v2407_v0, 0 }
  0x3d   :  { %1360 = vmatpush.bf16.xpose.msra.mxu2 %v990_v2  ;;  %v2423_v2 = vld [vmem:[%s3255_s0 + $0x180] sm:$0xff]  ;;  %v1062_v9 = vsel %vm937_vm0, %v2415_v1, 0 }
  0x3e   :  { %1374 = vmatpush.bf16.xpose.msra.mxu3 %v1014_v3  ;;  %v2431_v3 = vld [vmem:[%s3255_s0 + $0x1c0] sm:$0xff]  ;;  %v1086_v10 = vsel %vm937_vm0, %v2423_v2, 0 }
  0x3f   :  { %v1110_v11 = vsel %vm937_vm0, %v2431_v3, 0  ;;  %v2439_v1 = vld [vmem:[%s3255_s0 + $0x200] sm:$0xff] }
  0x40   :  { %v2447_v2 = vld [vmem:[%s3255_s0 + $0x240] sm:$0xff] }
  0x41   :  { %v2455_v3 = vld [vmem:[%s3255_s0 + $0x280] sm:$0xff] }
  0x42   :  { %2358 = vmatmul.msk.bf16.vlgmr.msra.gmra.mxu0 %vm937_vm0, %v2727_v14 }
  0x43   :  { %1381 = vmatpush.bf16.xpose.msrb.mxu0 %v1059_v4  ;;  %2359 = vmatmul.msk.bf16.vlgmr.msra.gmra.mxu1 %vm937_vm0, %v2727_v14  ;;  %v2446_v4 = vld [vmem:[%s3255_s0 + $0x238] sm:$0xff] }
  0x44   :  { %1395 = vmatpush.bf16.xpose.msrb.mxu1 %v1083_v5  ;;  %2360 = vmatmul.msk.bf16.vlgmr.msra.gmra.mxu2 %vm937_vm0, %v2727_v14  ;;  %v2454_v5 = vld [vmem:[%s3255_s0 + $0x278] sm:$0xff]  ;;  %v1155_v12 = vsel %vm937_vm0, %v2446_v4, 0  ;;  %v2463_v4 = vld [vmem:[%s3255_s0 + $0x2c0] sm:$0xff] }
  0x45   :  { %1409 = vmatpush.bf16.xpose.msrb.mxu2 %v1107_v6  ;;  %2361 = vmatmul.msk.bf16.vlgmr.msra.gmra.mxu3 %vm937_vm0, %v2727_v14  ;;  %v2462_v6 = vld [vmem:[%s3255_s0 + $0x2b8] sm:$0xff]  ;;  %v1179_v13 = vsel %vm937_vm0, %v2454_v5, 0 }
  0x46   :  { %1423 = vmatpush.bf16.xpose.msrb.mxu3 %v1131_v7  ;;  %v2470_v7 = vld [vmem:[%s3255_s0 + $0x2f8] sm:$0xff] }
  0x47   :  { %v2478_v5 = vld [vmem:[%s3255_s0 + $0x338] sm:$0xff] }
  0x4b   :  { %1382 = vmatpush.bf16.xpose.msrb.mxu0 %v1056_v15  ;;  %v1203_v15 = vsel %vm937_vm0, %v2462_v6, 0  ;;  %v2486_v6 = vld [vmem:[%s3255_s0 + $0x378] sm:$0xff] }
  0x4c   :  { %1396 = vmatpush.bf16.xpose.msrb.mxu1 %v1080_v16  ;;  %v1227_v16 = vsel %vm937_vm0, %v2470_v7, 0  ;;  %v2494_v7 = vld [vmem:[%s3255_s0 + $0x3b8] sm:$0xff] }
  0x4d   :  { %1410 = vmatpush.bf16.xpose.msrb.mxu2 %v1104_v17  ;;  %v2445_v17 = vld [vmem:[%s3255_s0 + $0x230] sm:$0xff] }
  0x4e   :  { %1424 = vmatpush.bf16.xpose.msrb.mxu3 %v1128_v18  ;;  %v2453_v18 = vld [vmem:[%s3255_s0 + $0x270] sm:$0xff]  ;;  %v1152_v21 = vsel %vm937_vm0, %v2445_v17, 0 }
  0x4f   :  { %v1176_v22 = vsel %vm937_vm0, %v2453_v18, 0  ;;  %v2477_v18 = vld [vmem:[%s3255_s0 + $0x330] sm:$0xff] }
  0x53   :  { %1383 = vmatpush.bf16.xpose.msrb.mxu0 %v1053_v23  ;;  %v1200_v23 = vsel %vm937_vm0, %v2461_v19, 0  ;;  %v2485_v19 = vld [vmem:[%s3255_s0 + $0x370] sm:$0xff] }
  0x54   :  { %1397 = vmatpush.bf16.xpose.msrb.mxu1 %v1077_v24  ;;  %v1224_v24 = vsel %vm937_vm0, %v2469_v20, 0  ;;  %v2493_v20 = vld [vmem:[%s3255_s0 + $0x3b0] sm:$0xff] }
  0x55   :  { %1411 = vmatpush.bf16.xpose.msrb.mxu2 %v1101_v25  ;;  %v2444_v25 = vld [vmem:[%s3255_s0 + $0x228] sm:$0xff] }
  0x56   :  { %1425 = vmatpush.bf16.xpose.msrb.mxu3 %v1125_v26  ;;  %v2452_v26 = vld [vmem:[%s3255_s0 + $0x268] sm:$0xff]  ;;  %v1149_v29 = vsel %vm937_vm0, %v2444_v25, 0 }
  0x57   :  { %v1173_v30 = vsel %vm937_vm0, %v2452_v26, 0  ;;  %v2476_v26 = vld [vmem:[%s3255_s0 + $0x328] sm:$0xff] }
  0x5b   :  { %1384 = vmatpush.bf16.xpose.msrb.mxu0 %v1050_v31  ;;  %v1197_v31 = vsel %vm937_vm0, %v2460_v27, 0  ;;  %v2484_v27 = vld [vmem:[%s3255_s0 + $0x368] sm:$0xff] }
  0x5c   :  { %1398 = vmatpush.bf16.xpose.msrb.mxu1 %v1074_v32  ;;  %v1221_v32 = vsel %vm937_vm0, %v2468_v28, 0  ;;  %v2492_v28 = vld [vmem:[%s3255_s0 + $0x3a8] sm:$0xff] }
  0x5d   :  { %1412 = vmatpush.bf16.xpose.msrb.mxu2 %v1098_v33  ;;  %v2443_v33 = vld [vmem:[%s3255_s0 + $0x220] sm:$0xff] }
  0x5e   :  { %1426 = vmatpush.bf16.xpose.msrb.mxu3 %v1122_v34  ;;  %v2451_v34 = vld [vmem:[%s3255_s0 + $0x260] sm:$0xff]  ;;  %v1146_v37 = vsel %vm937_vm0, %v2443_v33, 0 }
  0x5f   :  { %v1170_v38 = vsel %vm937_vm0, %v2451_v34, 0  ;;  %v2475_v34 = vld [vmem:[%s3255_s0 + $0x320] sm:$0xff] }
  0x63   :  { %1385 = vmatpush.bf16.xpose.msrb.mxu0 %v1047_v42  ;;  %v2450_v42 = vld [vmem:[%s3255_s0 + $0x258] sm:$0xff] }
  0x64   :  { %1399 = vmatpush.bf16.xpose.msrb.mxu1 %v1071_v43  ;;  %v2458_v43 = vld [vmem:[%s3255_s0 + $0x298] sm:$0xff]  ;;  %v1167_v46 = vsel %vm937_vm0, %v2450_v42, 0 }
  0x65   :  { %1413 = vmatpush.bf16.xpose.msrb.mxu2 %v1095_v44  ;;  %v2466_v44 = vld [vmem:[%s3255_s0 + $0x2d8] sm:$0xff]  ;;  %v1191_v47 = vsel %vm937_vm0, %v2458_v43, 0 }
  0x66   :  { %1427 = vmatpush.bf16.xpose.msrb.mxu3 %v1119_v45  ;;  %v1143_v45 = vsel %vm937_vm0, %v2442_v41, 0  ;;  %v1215_v48 = vsel %vm937_vm0, %v2466_v44, 0  ;;  %v2474_v42 = vld [vmem:[%s3255_s0 + $0x318] sm:$0xff] }
  0x67   :  { %v2482_v43 = vld [vmem:[%s3255_s0 + $0x358] sm:$0xff] }
  0x68   :  { %v2490_v44 = vld [vmem:[%s3255_s0 + $0x398] sm:$0xff] }
  0x6b   :  { %1386 = vmatpush.bf16.xpose.msrb.mxu0 %v1044_v52  ;;  %v2465_v52 = vld [vmem:[%s3255_s0 + $0x2d0] sm:$0xff] }
  0x6c   :  { %1400 = vmatpush.bf16.xpose.msrb.mxu1 %v1068_v53  ;;  %v1140_v53 = vsel %vm937_vm0, %v2441_v49, 0  ;;  %v1212_v56 = vsel %vm937_vm0, %v2465_v52, 0  ;;  %v2489_v52 = vld [vmem:[%s3255_s0 + $0x390] sm:$0xff] }
  0x6d   :  { %1414 = vmatpush.bf16.xpose.msrb.mxu2 %v1092_v54  ;;  %v1164_v54 = vsel %vm937_vm0, %v2449_v50, 0  ;;  %v2473_v50 = vld [vmem:[%s3255_s0 + $0x310] sm:$0xff] }
  0x6e   :  { %1428 = vmatpush.bf16.xpose.msrb.mxu3 %v1116_v55  ;;  %v1188_v55 = vsel %vm937_vm0, %v2457_v51, 0  ;;  %v2481_v51 = vld [vmem:[%s3255_s0 + $0x350] sm:$0xff] }
  0x73   :  { %1387 = vmatpush.bf16.xpose.msrb.mxu0 %v1041_v60  ;;  %v2464_v60 = vld [vmem:[%s3255_s0 + $0x2c8] sm:$0xff] }
  0x74   :  { %1401 = vmatpush.bf16.xpose.msrb.mxu1 %v1065_v61  ;;  %v1137_v61 = vsel %vm937_vm0, %v2440_v57, 0  ;;  %v1209_v0 = vsel %vm937_vm0, %v2464_v60, 0  ;;  %v2488_v60 = vld [vmem:[%s3255_s0 + $0x388] sm:$0xff] }
  0x75   :  { %1415 = vmatpush.bf16.xpose.msrb.mxu2 %v1089_v62  ;;  %v1161_v62 = vsel %vm937_vm0, %v2448_v58, 0  ;;  %v2472_v58 = vld [vmem:[%s3255_s0 + $0x308] sm:$0xff] }
  0x76   :  { %1429 = vmatpush.bf16.xpose.msrb.mxu3 %v1113_v63  ;;  %v1185_v63 = vsel %vm937_vm0, %v2456_v59, 0  ;;  %v2480_v59 = vld [vmem:[%s3255_s0 + $0x348] sm:$0xff] }
  0x7b   :  { %1388 = vmatpush.bf16.xpose.msrb.mxu0 %v1038_v8  ;;  %v2502_v8 = vld [vmem:[%s3255_s0 + $0x3f8] sm:$0xff] }
  0x7c   :  { %1402 = vmatpush.bf16.xpose.msrb.mxu1 %v1062_v9  ;;  %v1134_v9 = vsel %vm937_vm0, %v2439_v1, 0  ;;  %v1323_v17 = vsel %vm937_vm0, %v2502_v8, 0  ;;  %v2479_v8 = vld [vmem:[%s3255_s0 + $0x340] sm:$0xff] }
  0x7d   :  { %1416 = vmatpush.bf16.xpose.msrb.mxu2 %v1086_v10  ;;  %v1158_v10 = vsel %vm937_vm0, %v2447_v2, 0 }
  0x7e   :  { %1430 = vmatpush.bf16.xpose.msrb.mxu3 %v1110_v11  ;;  %v1182_v11 = vsel %vm937_vm0, %v2455_v3, 0  ;;  %v1281_v3 = vsel %vm937_vm0, %v2488_v60, 0 }
  0x82   :  { %2362 = vmatmul.msk.bf16.vlgmr.msrb.gmra.mxu0 %vm937_vm0, %v2727_v14 }
  0x83   :  { %1437 = vmatpush.bf16.xpose.msra.mxu0 %v1155_v12  ;;  %2363 = vmatmul.msk.bf16.vlgmr.msrb.gmra.mxu1 %vm937_vm0, %v2727_v14  ;;  %v1206_v12 = vsel %vm937_vm0, %v2463_v4, 0 }
  0x84   :  { %1451 = vmatpush.bf16.xpose.msra.mxu1 %v1179_v13  ;;  %2364 = vmatmul.msk.bf16.vlgmr.msrb.gmra.mxu2 %vm937_vm0, %v2727_v14  ;;  %v1251_v13 = vsel %vm937_vm0, %v2478_v5, 0 }
  0x85   :  { %1465 = vmatpush.bf16.xpose.msra.mxu2 %v1203_v15  ;;  %2365 = vmatmul.msk.bf16.vlgmr.msrb.gmra.mxu3 %vm937_vm0, %v2727_v14  ;;  %v1275_v15 = vsel %vm937_vm0, %v2486_v6, 0 }
  0x86   :  { %1479 = vmatpush.bf16.xpose.msra.mxu3 %v1227_v16  ;;  %v1299_v16 = vsel %vm937_vm0, %v2494_v7, 0  ;;  %v2471_v7 = vld [vmem:[%s3255_s0 + $0x300] sm:$0xff] }
  0x8b   :  { %1438 = vmatpush.bf16.xpose.msra.mxu0 %v1152_v21  ;;  %v2501_v21 = vld [vmem:[%s3255_s0 + $0x3f0] sm:$0xff] }
  0x8c   :  { %1452 = vmatpush.bf16.xpose.msra.mxu1 %v1176_v22  ;;  %v1248_v22 = vsel %vm937_vm0, %v2477_v18, 0  ;;  %v1320_v25 = vsel %vm937_vm0, %v2501_v21, 0 }
  0x8d   :  { %1466 = vmatpush.bf16.xpose.msra.mxu2 %v1200_v23  ;;  %v1272_v23 = vsel %vm937_vm0, %v2485_v19, 0 }
  0x8e   :  { %1480 = vmatpush.bf16.xpose.msra.mxu3 %v1224_v24  ;;  %v1296_v24 = vsel %vm937_vm0, %v2493_v20, 0 }
  0x93   :  { %1439 = vmatpush.bf16.xpose.msra.mxu0 %v1149_v29  ;;  %v2500_v29 = vld [vmem:[%s3255_s0 + $0x3e8] sm:$0xff] }
  0x94   :  { %1453 = vmatpush.bf16.xpose.msra.mxu1 %v1173_v30  ;;  %v1245_v30 = vsel %vm937_vm0, %v2476_v26, 0  ;;  %v1317_v33 = vsel %vm937_vm0, %v2500_v29, 0 }
  0x95   :  { %1467 = vmatpush.bf16.xpose.msra.mxu2 %v1197_v31  ;;  %v1269_v31 = vsel %vm937_vm0, %v2484_v27, 0 }
  0x96   :  { %1481 = vmatpush.bf16.xpose.msra.mxu3 %v1221_v32  ;;  %v1293_v32 = vsel %vm937_vm0, %v2492_v28, 0 }
  0x9a   :  { %v3105_v6 = vpop.permute.xlu0 %289 }
  0x9b   :  { %1440 = vmatpush.bf16.xpose.msra.mxu0 %v1146_v37  ;;  %v2499_v37 = vld [vmem:[%s3255_s0 + $0x3e0] sm:$0xff] }
  0x9c   :  { %1454 = vmatpush.bf16.xpose.msra.mxu1 %v1170_v38  ;;  %v1242_v38 = vsel %vm937_vm0, %v2475_v34, 0  ;;  %v1314_v41 = vsel %vm937_vm0, %v2499_v37, 0 }
  0x9d   :  { %1468 = vmatpush.bf16.xpose.msra.mxu2 %v1194_v39  ;;  %v1266_v39 = vsel %vm937_vm0, %v2483_v35, 0 }
  0x9e   :  { %1482 = vmatpush.bf16.xpose.msra.mxu3 %v1218_v40  ;;  %v1290_v40 = vsel %vm937_vm0, %v2491_v36, 0 }
  0xa3   :  { %1441 = vmatpush.bf16.xpose.msra.mxu0 %v1143_v45  ;;  %v2498_v45 = vld [vmem:[%s3255_s0 + $0x3d8] sm:$0xff] }
  0xa4   :  { %1455 = vmatpush.bf16.xpose.msra.mxu1 %v1167_v46  ;;  %v1239_v46 = vsel %vm937_vm0, %v2474_v42, 0  ;;  %v1311_v49 = vsel %vm937_vm0, %v2498_v45, 0 }
  0xa5   :  { %1469 = vmatpush.bf16.xpose.msra.mxu2 %v1191_v47  ;;  %v1263_v47 = vsel %vm937_vm0, %v2482_v43, 0 }
  0xa6   :  { %1483 = vmatpush.bf16.xpose.msra.mxu3 %v1215_v48  ;;  %v1287_v48 = vsel %vm937_vm0, %v2490_v44, 0 }
  0xab   :  { %1442 = vmatpush.bf16.xpose.msra.mxu0 %v1140_v53  ;;  %v2497_v53 = vld [vmem:[%s3255_s0 + $0x3d0] sm:$0xff] }
  0xac   :  { %1456 = vmatpush.bf16.xpose.msra.mxu1 %v1164_v54  ;;  %v1236_v54 = vsel %vm937_vm0, %v2473_v50, 0  ;;  %v1308_v57 = vsel %vm937_vm0, %v2497_v53, 0 }
  0xad   :  { %1470 = vmatpush.bf16.xpose.msra.mxu2 %v1188_v55  ;;  %v1260_v55 = vsel %vm937_vm0, %v2481_v51, 0 }
  0xae   :  { %1484 = vmatpush.bf16.xpose.msra.mxu3 %v1212_v56  ;;  %v1284_v56 = vsel %vm937_vm0, %v2489_v52, 0 }
  0xb3   :  { %1443 = vmatpush.bf16.xpose.msra.mxu0 %v1137_v61  ;;  %v2496_v61 = vld [vmem:[%s3255_s0 + $0x3c8] sm:$0xff] }
  0xb4   :  { %1457 = vmatpush.bf16.xpose.msra.mxu1 %v1161_v62  ;;  %v1305_v4 = vsel %vm937_vm0, %v2496_v61, 0 }
  0xb5   :  { %1471 = vmatpush.bf16.xpose.msra.mxu2 %v1185_v63  ;;  %v1233_v63 = vsel %vm937_vm0, %v2472_v58, 0 }
  0xb6   :  { %1485 = vmatpush.bf16.xpose.msra.mxu3 %v1209_v0  ;;  %v1257_v0 = vsel %vm937_vm0, %v2480_v59, 0 }
  0xbb   :  { %1444 = vmatpush.bf16.xpose.msra.mxu0 %v1134_v9  ;;  %v2487_v9 = vld [vmem:[%s3255_s0 + $0x380] sm:$0xff] }
  0xbc   :  { %1458 = vmatpush.bf16.xpose.msra.mxu1 %v1158_v10  ;;  %v2495_v10 = vld [vmem:[%s3255_s0 + $0x3c0] sm:$0xff] }
  0xbd   :  { %1472 = vmatpush.bf16.xpose.msra.mxu2 %v1182_v11  ;;  %v1230_v11 = vsel %vm937_vm0, %v2471_v7, 0 }
  0xbe   :  { %1486 = vmatpush.bf16.xpose.msra.mxu3 %v1206_v12  ;;  %v1254_v12 = vsel %vm937_vm0, %v2479_v8, 0 }
  0xbf   :  { %v1334_v5 = vpop.f32.mrf.mxu0 }
  0xc0   :  { %v1348_v62 = vpop.f32.mrf.mxu1 }
  0xc2   :  { %2366 = vmatmul.msk.bf16.vlgmr.msra.gmra.mxu0 %vm937_vm0, %v2727_v14 }
  0xc3   :  { %1493 = vmatpush.bf16.xpose.msrb.mxu0 %v1251_v13  ;;  %2367 = vmatmul.msk.bf16.vlgmr.msra.gmra.mxu1 %vm937_vm0, %v2727_v14  ;;  %v1278_v13 = vsel %vm937_vm0, %v2487_v9, 0 }
  0xc4   :  { %1507 = vmatpush.bf16.xpose.msrb.mxu1 %v1275_v15  ;;  %2368 = vmatmul.msk.bf16.vlgmr.msra.gmra.mxu2 %vm937_vm0, %v2727_v14  ;;  %v1302_v15 = vsel %vm937_vm0, %v2495_v10, 0 }
  0xc5   :  { %1521 = vmatpush.bf16.xpose.msrb.mxu2 %v1299_v16  ;;  %2369 = vmatmul.msk.bf16.vlgmr.msra.gmra.mxu3 %vm937_vm0, %v2727_v14  ;;  %v3123_v16 = vpop.permute.xlu1 %1590 }
  0xc6   :  { %1535 = vmatpush.bf16.xpose.msrb.mxu3 %v1323_v17 }
  0xc7   :  { %v1362_v1 = vpop.f32.mrf.mxu2  ;;  %v1336_v20 = vpop.f32.mrf.mxu0 }
  0xc8   :  { %v1376_v2 = vpop.f32.mrf.mxu3  ;;  %v1350_v17 = vpop.f32.mrf.mxu1 }
  0xc9   :  { %v1351_v21 = vadd.f32 %v1350_v17, %v3105_v6 }
  0xcb   :  { %1494 = vmatpush.bf16.xpose.msrb.mxu0 %v1248_v22  ;;  %v3126_v22 = vpop.permute.xlu0 %284  ;;  %v1566_v27 = vmax.f32 %v1351_v21, 0.0 }
  0xcc   :  { %1508 = vmatpush.bf16.xpose.msrb.mxu1 %v1272_v23  ;;  %v1349_v26 = vadd.f32 %v1348_v62, %v3126_v22  ;;  %v1363_v28 = vadd.f32 %v1362_v1, %v3126_v22  ;;  %v1377_v29 = vadd.f32 %v1376_v2, %v3126_v22 }
  0xcd   :  { %1522 = vmatpush.bf16.xpose.msrb.mxu2 %v1296_v24  ;;  %v1610_v35 = vmul.f32 %v3123_v16, %v1566_v27  ;;  %v3144_v36 = vpop.permute.xlu1 %1585 }
  0xce   :  { %1536 = vmatpush.bf16.xpose.msrb.mxu3 %v1320_v25  ;;  %v1337_v25 = vadd.f32 %v1336_v20, %v3105_v6  ;;  %v1550_v34 = vmax.f32 %v1349_v26, 0.0  ;;  %v1551_v37 = vmax.f32 %v1363_v28, 0.0 }
  0xcf   :  { %v1364_v18 = vpop.f32.mrf.mxu2  ;;  %v1634_v44 = vsel %vm1625_vm1, %v1610_v35, 0.0 }
  0xd0   :  { %v1378_v19 = vpop.f32.mrf.mxu3  ;;  %v1365_v23 = vadd.f32 %v1364_v18, %v3105_v6  ;;  %v1594_v43 = vmul.f32 %v3144_v36, %v1550_v34 }
  0xd1   :  { %v1379_v24 = vadd.f32 %v1378_v19, %v3105_v6 }
  0xd2   :  { %v1635_v52 = vadd.f32 %v1634_v44, %v1594_v43 }
  0xd3   :  { %1495 = vmatpush.bf16.xpose.msrb.mxu0 %v1245_v30  ;;  %v1567_v30 = vmax.f32 %v1365_v23, 0.0 }
  0xd4   :  { %1509 = vmatpush.bf16.xpose.msrb.mxu1 %v1269_v31  ;;  %v1568_v31 = vmax.f32 %v1379_v24, 0.0  ;;  %v1636_v58 = vrot.slane %v1635_v52, 4 }
  0xd5   :  { %1523 = vmatpush.bf16.xpose.msrb.mxu2 %v1293_v32  ;;  %v1335_v32 = vadd.f32 %v1334_v5, %v3126_v22 }
  0xd6   :  { %1537 = vmatpush.bf16.xpose.msrb.mxu3 %v1317_v33  ;;  %v1565_v33 = vmax.f32 %v1337_v25, 0.0 }
  0xd8   :  { %v1609_v42 = vmul.f32 %v3123_v16, %v1565_v33 }
  0xdb   :  { %1496 = vmatpush.bf16.xpose.msrb.mxu0 %v1242_v38  ;;  %v1552_v38 = vmax.f32 %v1377_v29, 0.0 }
  0xdc   :  { %1510 = vmatpush.bf16.xpose.msrb.mxu1 %v1266_v39  ;;  %v1611_v39 = vmul.f32 %v3123_v16, %v1567_v30 }
  0xdd   :  { %1524 = vmatpush.bf16.xpose.msrb.mxu2 %v1290_v40  ;;  %v1612_v40 = vmul.f32 %v3123_v16, %v1568_v31  ;;  %v1596_v45 = vmul.f32 %v3144_v36, %v1552_v38 }
  0xde   :  { %1538 = vmatpush.bf16.xpose.msrb.mxu3 %v1314_v41  ;;  %v1549_v41 = vmax.f32 %v1335_v32, 0.0 }
  0xe3   :  { %1497 = vmatpush.bf16.xpose.msrb.mxu0 %v1239_v46  ;;  %v1642_v46 = vsel %vm1625_vm1, %v1611_v39, 0.0 }
  0xe4   :  { %1511 = vmatpush.bf16.xpose.msrb.mxu1 %v1263_v47  ;;  %v1650_v47 = vsel %vm1625_vm1, %v1612_v40, 0.0 }
  0xe5   :  { %1525 = vmatpush.bf16.xpose.msrb.mxu2 %v1287_v48  ;;  %v1593_v48 = vmul.f32 %v3144_v36, %v1549_v41 }
  0xe6   :  { %1539 = vmatpush.bf16.xpose.msrb.mxu3 %v1311_v49  ;;  %v1626_v49 = vsel %vm1625_vm1, %v1609_v42, 0.0 }
  0xeb   :  { %1498 = vmatpush.bf16.xpose.msrb.mxu0 %v1236_v54  ;;  %v1651_v54 = vadd.f32 %v1650_v47, %v1596_v45 }
  0xec   :  { %1512 = vmatpush.bf16.xpose.msrb.mxu1 %v1260_v55  ;;  %v1627_v55 = vadd.f32 %v1626_v49, %v1593_v48 }
  0xed   :  { %1526 = vmatpush.bf16.xpose.msrb.mxu2 %v1284_v56  ;;  %v1652_v60 = vrot.slane %v1651_v54, 4 }
  0xee   :  { %1540 = vmatpush.bf16.xpose.msrb.mxu3 %v1308_v57  ;;  %v1628_v61 = vrot.slane %v1627_v55, 4 }
  0xef   :  { %v1653_v9 = vadd.f32 %v1652_v60, %v1651_v54 }
  0xf0   :  { %v1629_v10 = vadd.f32 %v1628_v61, %v1627_v55 }
  0xf1   :  { %v1654_v24 = vrot.slane %v1653_v9, 2 }
  0xf2   :  { %v1630_v25 = vrot.slane %v1629_v10, 2 }
  0xf3   :  { %1499 = vmatpush.bf16.xpose.msrb.mxu0 %v1233_v63  ;;  %v1655_v39 = vadd.f32 %v1654_v24, %v1653_v9 }
  0xf4   :  { %1513 = vmatpush.bf16.xpose.msrb.mxu1 %v1257_v0  ;;  %v1631_v45 = vadd.f32 %v1630_v25, %v1629_v10 }
  0xf5   :  { %1527 = vmatpush.bf16.xpose.msrb.mxu2 %v1281_v3 }
  0xf6   :  { %1541 = vmatpush.bf16.xpose.msrb.mxu3 %v1305_v4  ;;  %v1637_v4 = vadd.f32 %v1636_v58, %v1635_v52  ;;  %v1656_v52 = vrot.slane %v1655_v39, 1  ;;  %v1632_v61 = vrot.slane %v1631_v45, 1 }
  0xf8   :  { %v1638_v19 = vrot.slane %v1637_v4, 2 }
  0xfb   :  { %1500 = vmatpush.bf16.xpose.msrb.mxu0 %v1230_v11 }
  0xfc   :  { %1514 = vmatpush.bf16.xpose.msrb.mxu1 %v1254_v12 }
  0xfd   :  { %1528 = vmatpush.bf16.xpose.msrb.mxu2 %v1278_v13 }
  0xfe   :  { %1542 = vmatpush.bf16.xpose.msrb.mxu3 %v1302_v15 }
  0xff   :  { %v1390_v50 = vpop.f32.mrf.mxu0 }
 0x100   :  { %v1404_v51 = vpop.f32.mrf.mxu1  ;;  %v1391_v56 = vadd.f32 %v1390_v50, %v3126_v22 }
 0x101   :  { %v1405_v57 = vadd.f32 %v1404_v51, %v3126_v22 }
 0x102   :  { %2370 = vmatmul.msk.bf16.vlgmr.msrb.gmra.mxu0 %vm937_vm0, %v2727_v14  ;;  %v1553_v0 = vmax.f32 %v1391_v56, 0.0 }
 0x103   :  { %2371 = vmatmul.msk.bf16.vlgmr.msrb.gmra.mxu1 %vm937_vm0, %v2727_v14  ;;  %v1554_v1 = vmax.f32 %v1405_v57, 0.0 }
 0x104   :  { %2372 = vmatmul.msk.bf16.vlgmr.msrb.gmra.mxu2 %vm937_vm0, %v2727_v14  ;;  %v1597_v17 = vmul.f32 %v3144_v36, %v1553_v0 }
 0x105   :  { %2373 = vmatmul.msk.bf16.vlgmr.msrb.gmra.mxu3 %vm937_vm0, %v2727_v14  ;;  %v1595_v14 = vmul.f32 %v3144_v36, %v1551_v37  ;;  %v1598_v18 = vmul.f32 %v3144_v36, %v1554_v1  ;;  %v1639_v37 = vadd.f32 %v1638_v19, %v1637_v4 }
 0x107   :  { %v1643_v53 = vadd.f32 %v1642_v46, %v1595_v14  ;;  %v1418_v62 = vpop.f32.mrf.mxu2  ;;  %v1392_v2 = vpop.f32.mrf.mxu0  ;;  %v1640_v50 = vrot.slane %v1639_v37, 1 }
 0x108   :  { %v1432_v63 = vpop.f32.mrf.mxu3  ;;  %v1406_v3 = vpop.f32.mrf.mxu1  ;;  %v1393_v5 = vadd.f32 %v1392_v2, %v3105_v6  ;;  %v1419_v11 = vadd.f32 %v1418_v62, %v3126_v22  ;;  %v3180_v62 = vstv %s3259_s4  ;;  %s2534_s4 = smov [#allocation3]  }
 0x109   :  { %v1644_v59 = vrot.slane %v1643_v53, 4  ;;  %v1407_v7 = vadd.f32 %v1406_v3, %v3105_v6  ;;  %v1433_v12 = vadd.f32 %v1432_v63, %v3126_v22  ;;  %v1641_v1 = vadd.f32 %v1640_v50, %v1639_v37  ;;  %s1831_s18 = sshll.u32 %s2534_s4, 4  ;;  %s1832_s18 = int_to_ptr.vmem [resolvable:$true] %s1831_s18 }
 0x10a   :  { %v1569_v13 = vmax.f32 %v1393_v5, 0.0  ;;  %v1555_v26 = vmax.f32 %v1419_v11, 0.0  ;;  %v1657_v5 = vadd.f32 %v1656_v52, %v1655_v39 }
 0x10b   :  { %v1645_v8 = vadd.f32 %v1644_v59, %v1643_v53  ;;  %v1570_v15 = vmax.f32 %v1407_v7, 0.0  ;;  %v1556_v27 = vmax.f32 %v1433_v12, 0.0 }
 0x10c   :  { %v1613_v20 = vmul.f32 %v3123_v16, %v1569_v13  ;;  %v1599_v44 = vmul.f32 %v3144_v36, %v1555_v26  ;;  %v1633_v13 = vadd.f32 %v1632_v61, %v1631_v45 }
 0x10d   :  { %v1614_v21 = vmul.f32 %v3123_v16, %v1570_v15  ;;  %v1646_v23 = vrot.slane %v1645_v8, 2  ;;  %v1600_v14 = vmul.f32 %v3144_v36, %v1556_v27  ;;  %v1757_v15 = vadd.f32 %v3180_v62, %v1641_v1 }
 0x10e   :  { %v1658_v28 = vsel %vm1625_vm1, %v1613_v20, 0.0  ;;  %v1756_v26 = vadd.f32 %v3180_v62, %v1633_v13 }
 0x10f   :  { %v1666_v29 = vsel %vm1625_vm1, %v1614_v21, 0.0  ;;  %v1420_v30 = vpop.f32.mrf.mxu2  ;;  %v1659_v32 = vadd.f32 %v1658_v28, %v1597_v17  ;;  %v1647_v38 = vadd.f32 %v1646_v23, %v1645_v8  ;;  %v1788_v27 = vrot.slane %v1757_v15, 7 }
 0x110   :  { %v1434_v31 = vpop.f32.mrf.mxu3  ;;  %v1667_v33 = vadd.f32 %v1666_v29, %v1598_v18  ;;  %v1421_v34 = vadd.f32 %v1420_v30, %v3105_v6  ;;  %v1759_v18 = vadd.f32 %v3180_v62, %v1657_v5 }
 0x111   :  { %v1435_v35 = vadd.f32 %v1434_v31, %v3105_v6  ;;  %v1660_v40 = vrot.slane %v1659_v32, 4  ;;  %v1648_v51 = vrot.slane %v1647_v38, 1  ;;  %v1803_v37 = vsel %vm1802_vm2, %v1756_v26, %v1788_v27 }
 0x112   :  { %v1668_v41 = vrot.slane %v1667_v33, 4  ;;  %v1571_v42 = vmax.f32 %v1421_v34, 0.0  ;;  %v1790_v29 = vrot.slane %v1759_v18, 5 }
 0x113   :  { %v1572_v43 = vmax.f32 %v1435_v35, 0.0  ;;  %v1661_v46 = vadd.f32 %v1660_v40, %v1659_v32  ;;  %v1649_v4 = vadd.f32 %v1648_v51, %v1647_v38 }
 0x114   :  { %v1669_v47 = vadd.f32 %v1668_v41, %v1667_v33  ;;  %v1615_v48 = vmul.f32 %v3123_v16, %v1571_v42 }
 0x115   :  { %v1616_v49 = vmul.f32 %v3123_v16, %v1572_v43  ;;  %v1662_v53 = vrot.slane %v1661_v46, 2  ;;  %v1758_v17 = vadd.f32 %v3180_v62, %v1649_v4 }
 0x116   :  { %v1670_v54 = vrot.slane %v1669_v47, 2  ;;  %v1674_v55 = vsel %vm1625_vm1, %v1615_v48, 0.0 }
 0x117   :  { %v1682_v56 = vsel %vm1625_vm1, %v1616_v49, 0.0  ;;  %v1675_v57 = vadd.f32 %v1674_v55, %v1599_v44  ;;  %v1663_v59 = vadd.f32 %v1662_v53, %v1661_v46  ;;  %v1789_v28 = vrot.slane %v1758_v17, 6 }
 0x118   :  { %v1683_v58 = vadd.f32 %v1682_v56, %v1600_v14  ;;  %v1671_v60 = vadd.f32 %v1670_v54, %v1669_v47 }
 0x119   :  { %v1676_v63 = vrot.slane %v1675_v57, 4  ;;  %v1664_v2 = vrot.slane %v1663_v59, 1  ;;  %v1805_v38 = vsel %vm1804_vm3, %v1789_v28, %v1790_v29 }
 0x11a   :  { %v1684_v0 = vrot.slane %v1683_v58, 4  ;;  %v1672_v3 = vrot.slane %v1671_v60, 1  ;;  %v1806_v43 = vsel %vm1625_vm1, %v1803_v37, %v1805_v38 }
 0x11b   :  { %v1677_v7 = vadd.f32 %v1676_v63, %v1675_v57  ;;  %v1665_v9 = vadd.f32 %v1664_v2, %v1663_v59 }
 0x11c   :  { %v1685_v8 = vadd.f32 %v1684_v0, %v1683_v58  ;;  %v1673_v10 = vadd.f32 %v1672_v3, %v1671_v60 }
 0x11d   :  { %v1678_v11 = vrot.slane %v1677_v7, 2  ;;  %v1760_v19 = vadd.f32 %v3180_v62, %v1665_v9 }
 0x11e   :  { %v1686_v12 = vrot.slane %v1685_v8, 2  ;;  %v1761_v20 = vadd.f32 %v3180_v62, %v1673_v10 }
 0x11f   :  { %v1679_v21 = vadd.f32 %v1678_v11, %v1677_v7  ;;  %v1791_v30 = vrot.slane %v1760_v19, 4 }
 0x120   :  { %v1687_v23 = vadd.f32 %v1686_v12, %v1685_v8  ;;  %v1792_v31 = vrot.slane %v1761_v20, 3 }
 0x121   :  { %v1680_v24 = vrot.slane %v1679_v21, 1 }
 0x122   :  { %v1688_v25 = vrot.slane %v1687_v23, 1  ;;  %v1808_v41 = vsel %vm1807_vm4, %v1791_v30, %v1792_v31 }
 0x123   :  { %v1681_v32 = vadd.f32 %v1680_v24, %v1679_v21 }
 0x124   :  { %v1689_v33 = vadd.f32 %v1688_v25, %v1687_v23 }
 0x125   :  { %v1762_v34 = vadd.f32 %v3180_v62, %v1681_v32 }
 0x126   :  { %v1763_v35 = vadd.f32 %v3180_v62, %v1689_v33 }
 0x127   :  { %v1793_v39 = vrot.slane %v1762_v34, 2 }
 0x128   :  { %v1794_v40 = vrot.slane %v1763_v35, 1 }
 0x12a   :  { %v1810_v42 = vsel %vm1809_vm5, %v1793_v39, %v1794_v40 }
 0x12b   :  { %v1812_v44 = vsel %vm1811_vm6, %v1808_v41, %v1810_v42 }
 0x12c   :  { %v1814_v14 = vsel %vm1813_vm7, %v1806_v43, %v1812_v44 }
 0x12d   :  { %1824 = vst [vmem:[#allocation3] sm:$0xff] %v1814_v14 }
 0x13f   :  { %v1446_v48 = vpop.f32.mrf.mxu0 }
 0x140   :  { %v1460_v45 = vpop.f32.mrf.mxu1  ;;  %v1447_v63 = vadd.f32 %v1446_v48, %v3126_v22 }
 0x141   :  { %v1461_v54 = vadd.f32 %v1460_v45, %v3126_v22 }
 0x142   :  { %v1557_v8 = vmax.f32 %v1447_v63, 0.0 }
 0x143   :  { %v1558_v61 = vmax.f32 %v1461_v54, 0.0 }
 0x144   :  { %v1601_v17 = vmul.f32 %v3144_v36, %v1557_v8 }
 0x145   :  { %v1602_v7 = vmul.f32 %v3144_v36, %v1558_v61 }
 0x147   :  { %v1474_v46 = vpop.f32.mrf.mxu2  ;;  %v1448_v53 = vpop.f32.mrf.mxu0 }
 0x148   :  { %v1488_v47 = vpop.f32.mrf.mxu3  ;;  %v1462_v49 = vpop.f32.mrf.mxu1  ;;  %v1449_v58 = vadd.f32 %v1448_v53, %v3105_v6  ;;  %v1475_v59 = vadd.f32 %v1474_v46, %v3126_v22 }
 0x149   :  { %v1463_v50 = vadd.f32 %v1462_v49, %v3105_v6  ;;  %v1489_v60 = vadd.f32 %v1488_v47, %v3126_v22 }
 0x14a   :  { %v1573_v3 = vmax.f32 %v1449_v58, 0.0  ;;  %v1559_v4 = vmax.f32 %v1475_v59, 0.0 }
 0x14b   :  { %v1574_v57 = vmax.f32 %v1463_v50, 0.0  ;;  %v1560_v5 = vmax.f32 %v1489_v60, 0.0 }
 0x14c   :  { %v1617_v12 = vmul.f32 %v3123_v16, %v1573_v3  ;;  %v1603_v13 = vmul.f32 %v3144_v36, %v1559_v4 }
 0x14d   :  { %v1618_v2 = vmul.f32 %v3123_v16, %v1574_v57  ;;  %v1604_v15 = vmul.f32 %v3144_v36, %v1560_v5 }
 0x14e   :  { %v1690_v24 = vsel %vm1625_vm1, %v1617_v12, 0.0 }
 0x14f   :  { %v1476_v51 = vpop.f32.mrf.mxu2  ;;  %v1698_v11 = vsel %vm1625_vm1, %v1618_v2, 0.0  ;;  %v1691_v28 = vadd.f32 %v1690_v24, %v1601_v17 }
 0x150   :  { %v1490_v52 = vpop.f32.mrf.mxu3  ;;  %v1477_v55 = vadd.f32 %v1476_v51, %v3105_v6  ;;  %v1699_v18 = vadd.f32 %v1698_v11, %v1602_v7 }
 0x151   :  { %v1491_v56 = vadd.f32 %v1490_v52, %v3105_v6  ;;  %v1692_v37 = vrot.slane %v1691_v28, 4 }
 0x152   :  { %v1575_v0 = vmax.f32 %v1477_v55, 0.0  ;;  %v1700_v27 = vrot.slane %v1699_v18, 4 }
 0x153   :  { %v1576_v1 = vmax.f32 %v1491_v56, 0.0  ;;  %v1693_v48 = vadd.f32 %v1692_v37, %v1691_v28 }
 0x154   :  { %v1619_v9 = vmul.f32 %v3123_v16, %v1575_v0  ;;  %v1701_v35 = vadd.f32 %v1700_v27, %v1699_v18 }
 0x155   :  { %v1620_v10 = vmul.f32 %v3123_v16, %v1576_v1  ;;  %v1694_v2 = vrot.slane %v1693_v48, 2 }
 0x156   :  { %v1706_v19 = vsel %vm1625_vm1, %v1619_v9, 0.0  ;;  %v1702_v47 = vrot.slane %v1701_v35, 2 }
 0x157   :  { %v1714_v20 = vsel %vm1625_vm1, %v1620_v10, 0.0  ;;  %v1707_v25 = vadd.f32 %v1706_v19, %v1603_v13  ;;  %v1695_v19 = vadd.f32 %v1694_v2, %v1693_v48 }
 0x158   :  { %v1715_v26 = vadd.f32 %v1714_v20, %v1604_v15  ;;  %v1703_v1 = vadd.f32 %v1702_v47, %v1701_v35 }
 0x159   :  { %v1708_v31 = vrot.slane %v1707_v25, 4 }
 0x15a   :  { %v1716_v32 = vrot.slane %v1715_v26, 4  ;;  %v1704_v18 = vrot.slane %v1703_v1, 1 }
 0x15b   :  { %v1709_v44 = vadd.f32 %v1708_v31, %v1707_v25 }
 0x15c   :  { %v1717_v14 = vadd.f32 %v1716_v32, %v1715_v26 }
 0x15d   :  { %v1710_v55 = vrot.slane %v1709_v44, 2 }
 0x15e   :  { %v1718_v56 = vrot.slane %v1717_v14, 2 }
 0x15f   :  { %v1711_v10 = vadd.f32 %v1710_v55, %v1709_v44 }
 0x160   :  { %v1719_v11 = vadd.f32 %v1718_v56, %v1717_v14 }
 0x161   :  { %v1712_v26 = vrot.slane %v1711_v10, 1 }
 0x162   :  { %v1720_v27 = vrot.slane %v1719_v11, 1 }
 0x17f   :  { %v1502_v21 = vpop.f32.mrf.mxu0 }
 0x180   :  { %v1516_v23 = vpop.f32.mrf.mxu1  ;;  %v1503_v29 = vadd.f32 %v1502_v21, %v3126_v22 }
 0x181   :  { %v1517_v30 = vadd.f32 %v1516_v23, %v3126_v22 }
 0x182   :  { %v1561_v42 = vmax.f32 %v1503_v29, 0.0 }
 0x183   :  { %v1562_v43 = vmax.f32 %v1517_v30, 0.0 }
 0x184   :  { %v1605_v53 = vmul.f32 %v3144_v36, %v1561_v42 }
 0x185   :  { %v1606_v54 = vmul.f32 %v3144_v36, %v1562_v43 }
 0x187   :  { %v1530_v33 = vpop.f32.mrf.mxu2  ;;  %v1504_v38 = vpop.f32.mrf.mxu0 }
 0x188   :  { %v1544_v34 = vpop.f32.mrf.mxu3  ;;  %v1518_v39 = vpop.f32.mrf.mxu1  ;;  %v1505_v40 = vadd.f32 %v1504_v38, %v3105_v6  ;;  %v1531_v49 = vadd.f32 %v1530_v33, %v3126_v22  ;;  %v1705_v33 = vadd.f32 %v1704_v18, %v1703_v1  ;;  %v1713_v38 = vadd.f32 %v1712_v26, %v1711_v10 }
 0x189   :  { %v1519_v41 = vadd.f32 %v1518_v39, %v3105_v6  ;;  %v1545_v50 = vadd.f32 %v1544_v34, %v3126_v22  ;;  %v1696_v34 = vrot.slane %v1695_v19, 1 }
 0x18a   :  { %v1577_v45 = vmax.f32 %v1505_v40, 0.0  ;;  %v1563_v3 = vmax.f32 %v1531_v49, 0.0  ;;  %v1765_v14 = vadd.f32 %v3180_v62, %v1705_v33 }
 0x18b   :  { %v1578_v46 = vmax.f32 %v1519_v41, 0.0  ;;  %v1564_v4 = vmax.f32 %v1545_v50, 0.0 }
 0x18c   :  { %v1621_v51 = vmul.f32 %v3123_v16, %v1577_v45  ;;  %v1697_v45 = vadd.f32 %v1696_v34, %v1695_v19 }
 0x18d   :  { %v1622_v52 = vmul.f32 %v3123_v16, %v1578_v46  ;;  %v1608_v20 = vmul.f32 %v3144_v36, %v1564_v4  ;;  %v1766_v46 = vadd.f32 %v3180_v62, %v1713_v38 }
 0x18e   :  { %v1722_v57 = vsel %vm1625_vm1, %v1621_v51, 0.0  ;;  %v1764_v55 = vadd.f32 %v3180_v62, %v1697_v45 }
 0x18f   :  { %v1730_v58 = vsel %vm1625_vm1, %v1622_v52, 0.0  ;;  %v1532_v59 = vpop.f32.mrf.mxu2  ;;  %v1723_v61 = vadd.f32 %v1722_v57, %v1605_v53  ;;  %v1796_v56 = vrot.slane %v1766_v46, 6 }
 0x190   :  { %v1546_v60 = vpop.f32.mrf.mxu3  ;;  %v1731_v63 = vadd.f32 %v1730_v58, %v1606_v54  ;;  %v1533_v22 = vadd.f32 %v1532_v59, %v3105_v6  ;;  %v1795_v54 = vrot.slane %v1765_v14, 7 }
 0x191   :  { %v1547_v0 = vadd.f32 %v1546_v60, %v3105_v6  ;;  %v1724_v5 = vrot.slane %v1723_v61, 4  ;;  %v1607_v6 = vmul.f32 %v3144_v36, %v1563_v3  ;;  %v1721_v36 = vadd.f32 %v1720_v27, %v1719_v11 }
 0x192   :  { %v1732_v7 = vrot.slane %v1731_v63, 4  ;;  %v1579_v8 = vmax.f32 %v1533_v22, 0.0  ;;  %v1815_v2 = vsel %vm1802_vm2, %v1764_v55, %v1795_v54 }
 0x193   :  { %v1580_v9 = vmax.f32 %v1547_v0, 0.0  ;;  %v1725_v12 = vadd.f32 %v1724_v5, %v1723_v61  ;;  %v1767_v47 = vadd.f32 %v3180_v62, %v1721_v36 }
 0x194   :  { %v1733_v13 = vadd.f32 %v1732_v7, %v1731_v63  ;;  %v1623_v15 = vmul.f32 %v3123_v16, %v1579_v8 }
 0x195   :  { %v1624_v17 = vmul.f32 %v3123_v16, %v1580_v9  ;;  %v1726_v21 = vrot.slane %v1725_v12, 2  ;;  %v1797_v57 = vrot.slane %v1767_v47, 5 }
 0x196   :  { %v1734_v23 = vrot.slane %v1733_v13, 2  ;;  %v1738_v24 = vsel %vm1625_vm1, %v1623_v15, 0.0 }
 0x197   :  { %v1746_v25 = vsel %vm1625_vm1, %v1624_v17, 0.0  ;;  %v1739_v28 = vadd.f32 %v1738_v24, %v1607_v6  ;;  %v1727_v30 = vadd.f32 %v1726_v21, %v1725_v12  ;;  %v1816_v3 = vsel %vm1804_vm3, %v1796_v56, %v1797_v57 }
 0x198   :  { %v1747_v29 = vadd.f32 %v1746_v25, %v1608_v20  ;;  %v1735_v31 = vadd.f32 %v1734_v23, %v1733_v13  ;;  %v1817_v7 = vsel %vm1625_vm1, %v1815_v2, %v1816_v3 }
 0x199   :  { %v1740_v32 = vrot.slane %v1739_v28, 4  ;;  %v1728_v35 = vrot.slane %v1727_v30, 1 }
 0x19a   :  { %v1748_v16 = vrot.slane %v1747_v29, 4  ;;  %v1736_v37 = vrot.slane %v1735_v31, 1 }
 0x19b   :  { %v1741_v39 = vadd.f32 %v1740_v32, %v1739_v28  ;;  %v1729_v41 = vadd.f32 %v1728_v35, %v1727_v30 }
 0x19c   :  { %v1749_v40 = vadd.f32 %v1748_v16, %v1747_v29  ;;  %v1737_v42 = vadd.f32 %v1736_v37, %v1735_v31 }
 0x19d   :  { %v1742_v43 = vrot.slane %v1741_v39, 2  ;;  %v1768_v50 = vadd.f32 %v3180_v62, %v1729_v41 }
 0x19e   :  { %v1750_v44 = vrot.slane %v1749_v40, 2  ;;  %v1769_v51 = vadd.f32 %v3180_v62, %v1737_v42 }
 0x19f   :  { %v1743_v48 = vadd.f32 %v1742_v43, %v1741_v39  ;;  %v1798_v60 = vrot.slane %v1768_v50, 4 }
 0x1a0   :  { %v1751_v49 = vadd.f32 %v1750_v44, %v1749_v40  ;;  %v1799_v61 = vrot.slane %v1769_v51, 3 }
 0x1a1   :  { %v1744_v52 = vrot.slane %v1743_v48, 1 }
 0x1a2   :  { %v1752_v53 = vrot.slane %v1751_v49, 1  ;;  %v1818_v4 = vsel %vm1807_vm4, %v1798_v60, %v1799_v61 }
 0x1a3   :  { %v1745_v58 = vadd.f32 %v1744_v52, %v1743_v48 }
 0x1a4   :  { %v1753_v59 = vadd.f32 %v1752_v53, %v1751_v49 }
 0x1a5   :  { %v1770_v63 = vadd.f32 %v3180_v62, %v1745_v58 }
 0x1a6   :  { %v1771_v22 = vadd.f32 %v3180_v62, %v1753_v59 }
 0x1a7   :  { %v1800_v0 = vrot.slane %v1770_v63, 2 }
 0x1a8   :  { %v1801_v1 = vrot.slane %v1771_v22, 1 }
 0x1aa   :  { %v1819_v5 = vsel %vm1809_vm5, %v1800_v0, %v1801_v1 }
 0x1ab   :  { %v1820_v62 = vsel %vm1811_vm6, %v1818_v4, %v1819_v5 }
 0x1ac   :  { %v1821_v8 = vsel %vm1813_vm7, %v1817_v7, %v1820_v62 }
 0x1ad   :  { %1825 = vst [vmem:[#allocation3 + $0x8] sm:$0xff] %v1821_v8 }
 0x1ae   :  { %1836 = dma.vmem_to_hbm [thread:$0]  %s1832_s18, 256, %s1834_s21, [#allocation4]  }
 0x1af   :  { %2531 = dma.done.wait [#allocation4], 256  }
 0x1b0   :  { %2532 = vsyncadd [#allocation4], 4294967040 }
 0x1b1   :  { %1841 = vsyncpa [#allocation4], 1 }

</bundles_post_ra>
